<compile_context>
chip_gen: v6e
topology: v6e:2x2x1
jax: 0.10.0
libtpu: 0.0.40
codegen_flags: <defaults>
</compile_context>

<pallas_src>
import functools

import jax
import jax.numpy as jnp
from jax.experimental import pallas as pl
from jax.experimental.pallas import tpu as pltpu

_LANE = 128
_OUTW = 3 * _LANE  # 384 lanes = 128 pixels x (x, y, z) interleaved


def _round_up(a, m):
    return ((a + m - 1) // m) * m


def _ray_dirs_kernel(coef_ref, dir_ref, *, tile_rows, batch, res):
    """Normalized ray directions, written pre-interleaved as (..., x, y, z).

    coef_ref : (batch * 9,) f32 SMEM.  coef[b*9 + r*3 + {0,1,2}] = (a0, a1, a2)
               for output channel r, so that ray_r = a0*j + a1*i + a2 with
               (i, j) the integer pixel coordinates (row, column).
    dir_ref  : (batch, tile_rows, 384) f32 VMEM.  Row rr, lane l of batch b is
               channel (l % 3) of pixel  t*tile_rows*128 + rr*128 + l//3,
               i.e. exactly the flat (B, N, 3) memory layout.
    """
    t = pl.program_id(0)
    inv_res = 1.0 / float(res)

    # ---- row-independent lane bookkeeping (1, 384), computed once per step ----
    lane = jax.lax.broadcasted_iota(jnp.int32, (1, _OUTW), 1).astype(jnp.float32)
    # q = lane // 3 (pixel within the 128-pixel group), ch = lane % 3 (channel).
    q = jnp.floor((lane + 0.5) * (1.0 / 3.0))
    ch = lane - 3.0 * q
    # Hoist the mask broadcasts out of the batch loop (no CSE of broadcast_in_dim).
    is_x = jnp.broadcast_to(ch < 0.5, (tile_rows, _OUTW))
    is_y = jnp.broadcast_to(ch < 1.5, (tile_rows, _OUTW))

    # ---- per-pixel index math, shared across the whole batch ----
    row = jax.lax.broadcasted_iota(jnp.int32, (tile_rows, _OUTW), 0)
    row = row.astype(jnp.float32)
    base = (t * (tile_rows * _LANE)).astype(jnp.float32)
    k = base + row * float(_LANE) + q          # flat pixel index, exact in f32
    # i = k // res, j = k % res.  The (k + 0.5) offset keeps floor() robust to
    # the rounding of inv_res for any realistic resolution (< ~2048).
    i = jnp.floor((k + 0.5) * inv_res)
    j = k - i * float(res)

    for b in range(batch):
        c = b * 9
        rx = coef_ref[c + 0] * j + coef_ref[c + 1] * i + coef_ref[c + 2]
        ry = coef_ref[c + 3] * j + coef_ref[c + 4] * i + coef_ref[c + 5]
        rz = coef_ref[c + 6] * j + coef_ref[c + 7] * i + coef_ref[c + 8]
        # F.normalize(dim=-1, eps=1e-12): rsqrt(max(ss, 1e-24)) == 1/max(||r||, 1e-12).
        inv_norm = jax.lax.rsqrt(jnp.maximum(rx * rx + ry * ry + rz * rz, 1e-24))
        sel = jnp.where(is_x, rx, jnp.where(is_y, ry, rz))
        dir_ref[b] = sel * inv_norm


def _fold_camera_coefficients(cam2world_matrix, intrinsics, resolution):
    """Fold lift(z=-1) + cam2world + uv scaling into 9 scalars per batch."""
    c2w = cam2world_matrix.astype(jnp.float32)
    intr = intrinsics.astype(jnp.float32)
    fx = intr[:, 0, 0]
    fy = intr[:, 1, 1]
    cx = intr[:, 0, 2]
    cy = intr[:, 1, 2]
    sk = intr[:, 0, 1]
    inv_fx = 1.0 / fx
    inv_fy = 1.0 / fy
    # lift() with z = -1 as an affine map of the camera-plane coords (x, y):
    #   x_lift = kx0*x + kx1*y + kx2 ;  y_lift = ky1*y + ky2
    kx0 = -inv_fx
    kx1 = sk * inv_fy * inv_fx
    kx2 = (cx - cy * sk * inv_fy) * inv_fx
    ky1 = -inv_fy
    ky2 = cy * inv_fy
    P = c2w[:, :3, :]                                     # (B, 3, 4)
    # ray_r = world_r - cam_loc_r ; translation P[r,3] cancels exactly:
    #   ray_r = c0*x + c1*y + c2
    c0 = P[:, :, 0] * kx0[:, None]
    c1 = P[:, :, 0] * kx1[:, None] + P[:, :, 1] * ky1[:, None]
    c2 = P[:, :, 0] * kx2[:, None] + P[:, :, 1] * ky2[:, None] - P[:, :, 2]
    # Fold x = (j + 0.5)/R, y = (i + 0.5)/R  ->  ray_r = a0*j + a1*i + a2.
    inv_res = 1.0 / resolution
    a0 = c0 * inv_res
    a1 = c1 * inv_res
    a2 = c2 + 0.5 * inv_res * (c0 + c1)
    B = c2w.shape[0]
    return jnp.stack([a0, a1, a2], axis=-1).reshape(B * 9)


def ray_sampler(cam2world_matrix, intrinsics, *, resolution,
                max_tile_rows=1024, expand_cam_locs=True):
    """Pallas implementation of RaySampler.forward.

    Returns (cam_locs, ray_dirs).  ray_dirs is (B, resolution**2, 3) float32.
    cam_locs is (B, resolution**2, 3) when expand_cam_locs=True (the PyTorch
    module's convention) or the non-redundant (B, 3) when False.
    """
    B = cam2world_matrix.shape[0]
    R = int(resolution)
    N = R * R

    # ---- tile-size selection -------------------------------------------------
    Nr = -(-N // _LANE)                                # rows of 128 pixels
    tile_rows = min(max_tile_rows, _round_up(Nr, 8))
    if Nr >= 16:
        # Keep >= 2 grid steps so the "parallel" axis can still shard across
        # both TensorCores on v7x even when the whole image fits in one tile.
        tile_rows = min(tile_rows, _round_up(-(-Nr // 2), 8))
    # Keep the double-buffered output block under ~8 MiB of VMEM.
    vmem_budget = 8 * 1024 * 1024
    cap = max(8, (vmem_budget // (B * _OUTW * 4 * 2)) // 8 * 8)
    tile_rows = max(8, min(tile_rows, cap))
    Nr_pad = _round_up(Nr, tile_rows)
    N_pad = Nr_pad * _LANE
    num_tiles = Nr_pad // tile_rows

    coef = _fold_camera_coefficients(cam2world_matrix, intrinsics, R)

    dirs = pl.pallas_call(
        functools.partial(_ray_dirs_kernel, tile_rows=tile_rows, batch=B, res=R),
        out_shape=jax.ShapeDtypeStruct((B, Nr_pad, _OUTW), jnp.float32),
        grid_spec=pltpu.PrefetchScalarGridSpec(
            num_scalar_prefetch=0,
            grid=(num_tiles,),
            in_specs=[pl.BlockSpec(memory_space=pltpu.MemorySpace.SMEM)],
            out_specs=pl.BlockSpec((B, tile_rows, _OUTW), lambda t: (0, t, 0)),
        ),
        compiler_params=pltpu.CompilerParams(dimension_semantics=("parallel",)),
    )(coef)

    # Free reshape: (B, Nr_pad, 384) already has the (B, N_pad, 3) memory layout.
    ray_dirs = dirs.reshape(B, N_pad, 3)
    if N_pad != N:
        ray_dirs = ray_dirs[:, :N, :]

    cam_loc = cam2world_matrix.astype(jnp.float32)[:, :3, 3]
    if expand_cam_locs:
        cam_locs = jnp.broadcast_to(cam_loc[:, None, :], (B, N, 3))
    else:
        # Non-materialized form: consumer broadcasts when actually needed.
        cam_locs = cam_loc
    return cam_locs, ray_dirs


def ray_sampler_ref(c2w, intr, resolution):
    """Pure-JAX reference mirroring the PyTorch module exactly."""
    B = c2w.shape[0]
    R = resolution
    ar = jnp.arange(R, dtype=jnp.float32) * (1.0 / R) + 0.5 / R
    ii, jj = jnp.meshgrid(ar, ar, indexing="ij")
    x = jnp.broadcast_to(jj.reshape(1, -1), (B, R * R))
    y = jnp.broadcast_to(ii.reshape(1, -1), (B, R * R))
    z = -jnp.ones_like(x)
    fx = intr[:, 0, 0][:, None]
    fy = intr[:, 1, 1][:, None]
    cx = intr[:, 0, 2][:, None]
    cy = intr[:, 1, 2][:, None]
    sk = intr[:, 0, 1][:, None]
    x_lift = (x - cx + cy * sk / fy - sk * y / fy) / fx * z
    y_lift = (y - cy) / fy * z
    ones = jnp.ones_like(z)
    comps = [x_lift, y_lift, z, ones]
    world = [sum(c2w[:, r, c][:, None] * comps[c] for c in range(4)) for r in range(3)]
    cam = c2w[:, :3, 3]
    rays = jnp.stack([world[r] - cam[:, r][:, None] for r in range(3)], axis=-1)
    norm = jnp.sqrt(jnp.sum(rays * rays, axis=-1, keepdims=True))
    rays = rays / jnp.maximum(norm, 1e-12)
    cam_locs = jnp.broadcast_to(cam[:, None, :], rays.shape)
    return cam_locs, rays


if __name__ == "__main__":
    key = jax.random.PRNGKey(0)
    k1, k2 = jax.random.split(key)

    B = 2
    resolution = 16  # N = 256 pixels per batch element

    # Deterministic cam2world matrices: near-identity rotation + random translation.
    rot = jnp.eye(3, dtype=jnp.float32)[None] + 0.1 * jax.random.normal(
        k1, (B, 3, 3), dtype=jnp.float32)
    trans = jax.random.normal(k2, (B, 3, 1), dtype=jnp.float32)
    top = jnp.concatenate([rot, trans], axis=2)
    bottom = jnp.broadcast_to(
        jnp.array([[[0.0, 0.0, 0.0, 1.0]]], dtype=jnp.float32), (B, 1, 4))
    cam2world = jnp.concatenate([top, bottom], axis=1)           # (B, 4, 4)

    # Deterministic intrinsics [[fx, sk, cx], [0, fy, cy], [0, 0, 1]].
    bidx = jnp.arange(B, dtype=jnp.float32)
    fx = 1.00 + 0.10 * bidx
    fy = 1.20 + 0.05 * bidx
    cx = jnp.full((B,), 0.5, jnp.float32)
    cy = jnp.full((B,), 0.5, jnp.float32)
    sk = jnp.full((B,), 0.05, jnp.float32)
    zeros = jnp.zeros((B,), jnp.float32)
    ones = jnp.ones((B,), jnp.float32)
    intrinsics = jnp.stack([jnp.stack([fx, sk, cx], -1),
                            jnp.stack([zeros, fy, cy], -1),
                            jnp.stack([zeros, zeros, ones], -1)], axis=1)  # (B, 3, 3)

    fn = jax.jit(functools.partial(ray_sampler, resolution=resolution))
    cam_locs, ray_dirs = fn(cam2world, intrinsics)
    jax.block_until_ready((cam_locs, ray_dirs))

    ref_cam, ref_dirs = ray_sampler_ref(cam2world, intrinsics, resolution)

    assert cam_locs.shape == (B, resolution * resolution, 3)
    assert ray_dirs.shape == (B, resolution * resolution, 3)
    assert jnp.allclose(cam_locs, ref_cam, atol=2e-5, rtol=2e-5)
    assert jnp.allclose(ray_dirs, ref_dirs, atol=2e-5, rtol=2e-5)

    print("KERNEL_OK")
</pallas_src>

<mosaic_0001>
module attributes {stable_mosaic.version = 11 : i64} {
  func.func @_ray_dirs_kernel(%arg0: i32, %arg1: memref<18xf32, #tpu.memory_space<smem>>, %arg2: memref<2x8x384xf32, #tpu.memory_space<vmem>>) attributes {dimension_semantics = [#tpu.dimension_semantics<parallel>], iteration_bounds = array<i64: 1>, scalar_prefetch = 0 : i64, scratch_operands = 0 : i64, tpu.core_type = #tpu.core_type<tc>, window_params = [{transform_indices = @transform_0, window_bounds = array<i64: 18>}, {transform_indices = @transform_1, window_bounds = array<i64: 2, 8, 384>}]} {
    %0 = tpu.iota {dimensions = array<i32: 1>} : vector<1x384xi32>
    %1 = arith.sitofp %0 : vector<1x384xi32> to vector<1x384xf32>
    %cst = arith.constant 5.000000e-01 : f32
    %2 = vector.broadcast %cst : f32 to vector<1x384xf32>
    %3 = arith.addf %1, %2 : vector<1x384xf32>
    %cst_0 = arith.constant 0.333333343 : f32
    %4 = vector.broadcast %cst_0 : f32 to vector<1x384xf32>
    %5 = arith.mulf %3, %4 : vector<1x384xf32>
    %6 = math.floor %5 : vector<1x384xf32>
    %cst_1 = arith.constant 3.000000e+00 : f32
    %7 = vector.broadcast %cst_1 : f32 to vector<1x384xf32>
    %8 = arith.mulf %7, %6 : vector<1x384xf32>
    %9 = arith.subf %1, %8 : vector<1x384xf32>
    %cst_2 = arith.constant 5.000000e-01 : f32
    %10 = vector.broadcast %cst_2 : f32 to vector<1x384xf32>
    %11 = arith.cmpf olt, %9, %10 : vector<1x384xf32>
    %12 = vector.shape_cast %11 : vector<1x384xi1> to vector<1x384xi1>
    %13 = vector.broadcast %12 : vector<1x384xi1> to vector<8x384xi1>
    %cst_3 = arith.constant 1.500000e+00 : f32
    %14 = vector.broadcast %cst_3 : f32 to vector<1x384xf32>
    %15 = arith.cmpf olt, %9, %14 : vector<1x384xf32>
    %16 = vector.shape_cast %15 : vector<1x384xi1> to vector<1x384xi1>
    %17 = vector.broadcast %16 : vector<1x384xi1> to vector<8x384xi1>
    %18 = tpu.iota {dimensions = array<i32: 0>} : vector<8x384xi32>
    %19 = arith.sitofp %18 : vector<8x384xi32> to vector<8x384xf32>
    %c1024_i32 = arith.constant 1024 : i32
    %20 = arith.muli %arg0, %c1024_i32 : i32
    %21 = arith.sitofp %20 : i32 to f32
    %cst_4 = arith.constant 1.280000e+02 : f32
    %22 = vector.broadcast %cst_4 : f32 to vector<8x384xf32>
    %23 = arith.mulf %19, %22 : vector<8x384xf32>
    %24 = vector.broadcast %21 : f32 to vector<8x384xf32>
    %25 = arith.addf %24, %23 : vector<8x384xf32>
    %26 = vector.broadcast %6 : vector<1x384xf32> to vector<8x384xf32>
    %27 = arith.addf %25, %26 : vector<8x384xf32>
    %cst_5 = arith.constant 5.000000e-01 : f32
    %28 = vector.broadcast %cst_5 : f32 to vector<8x384xf32>
    %29 = arith.addf %27, %28 : vector<8x384xf32>
    %cst_6 = arith.constant 6.250000e-02 : f32
    %30 = vector.broadcast %cst_6 : f32 to vector<8x384xf32>
    %31 = arith.mulf %29, %30 : vector<8x384xf32>
    %32 = math.floor %31 : vector<8x384xf32>
    %cst_7 = arith.constant 1.600000e+01 : f32
    %33 = vector.broadcast %cst_7 : f32 to vector<8x384xf32>
    %34 = arith.mulf %32, %33 : vector<8x384xf32>
    %35 = arith.subf %27, %34 : vector<8x384xf32>
    %c0 = arith.constant 0 : index
    %36 = memref.load %arg1[%c0] : memref<18xf32, #tpu.memory_space<smem>>
    %37 = vector.broadcast %36 : f32 to vector<8x384xf32>
    %38 = arith.mulf %37, %35 : vector<8x384xf32>
    %c1 = arith.constant 1 : index
    %39 = memref.load %arg1[%c1] : memref<18xf32, #tpu.memory_space<smem>>
    %40 = vector.broadcast %39 : f32 to vector<8x384xf32>
    %41 = arith.mulf %40, %32 : vector<8x384xf32>
    %42 = arith.addf %38, %41 : vector<8x384xf32>
    %c2 = arith.constant 2 : index
    %43 = memref.load %arg1[%c2] : memref<18xf32, #tpu.memory_space<smem>>
    %44 = vector.broadcast %43 : f32 to vector<8x384xf32>
    %45 = arith.addf %42, %44 : vector<8x384xf32>
    %c3 = arith.constant 3 : index
    %46 = memref.load %arg1[%c3] : memref<18xf32, #tpu.memory_space<smem>>
    %47 = vector.broadcast %46 : f32 to vector<8x384xf32>
    %48 = arith.mulf %47, %35 : vector<8x384xf32>
    %c4 = arith.constant 4 : index
    %49 = memref.load %arg1[%c4] : memref<18xf32, #tpu.memory_space<smem>>
    %50 = vector.broadcast %49 : f32 to vector<8x384xf32>
    %51 = arith.mulf %50, %32 : vector<8x384xf32>
    %52 = arith.addf %48, %51 : vector<8x384xf32>
    %c5 = arith.constant 5 : index
    %53 = memref.load %arg1[%c5] : memref<18xf32, #tpu.memory_space<smem>>
    %54 = vector.broadcast %53 : f32 to vector<8x384xf32>
    %55 = arith.addf %52, %54 : vector<8x384xf32>
    %c6 = arith.constant 6 : index
    %56 = memref.load %arg1[%c6] : memref<18xf32, #tpu.memory_space<smem>>
    %57 = vector.broadcast %56 : f32 to vector<8x384xf32>
    %58 = arith.mulf %57, %35 : vector<8x384xf32>
    %c7 = arith.constant 7 : index
    %59 = memref.load %arg1[%c7] : memref<18xf32, #tpu.memory_space<smem>>
    %60 = vector.broadcast %59 : f32 to vector<8x384xf32>
    %61 = arith.mulf %60, %32 : vector<8x384xf32>
    %62 = arith.addf %58, %61 : vector<8x384xf32>
    %c8 = arith.constant 8 : index
    %63 = memref.load %arg1[%c8] : memref<18xf32, #tpu.memory_space<smem>>
    %64 = vector.broadcast %63 : f32 to vector<8x384xf32>
    %65 = arith.addf %62, %64 : vector<8x384xf32>
    %66 = arith.mulf %45, %45 : vector<8x384xf32>
    %67 = arith.mulf %55, %55 : vector<8x384xf32>
    %68 = arith.addf %66, %67 : vector<8x384xf32>
    %69 = arith.mulf %65, %65 : vector<8x384xf32>
    %70 = arith.addf %68, %69 : vector<8x384xf32>
    %cst_8 = arith.constant 1.000000e-24 : f32
    %71 = vector.broadcast %cst_8 : f32 to vector<8x384xf32>
    %72 = arith.maximumf %70, %71 : vector<8x384xf32>
    %73 = math.rsqrt %72 : vector<8x384xf32>
    %74 = arith.select %17, %55, %65 : vector<8x384xi1>, vector<8x384xf32>
    %75 = arith.select %13, %45, %74 : vector<8x384xi1>, vector<8x384xf32>
    %76 = arith.mulf %75, %73 : vector<8x384xf32>
    %c0_9 = arith.constant 0 : index
    %c0_10 = arith.constant 0 : index
    %c0_11 = arith.constant 0 : index
    %77 = vector.load %arg2[%c0_9, %c0_10, %c0_11] : memref<2x8x384xf32, #tpu.memory_space<vmem>>, vector<1x8x384xf32>
    %78 = vector.shape_cast %77 : vector<1x8x384xf32> to vector<8x384xf32>
    %79 = vector.shape_cast %76 : vector<8x384xf32> to vector<1x8x384xf32>
    tpu.vector_store %arg2[%c0_9, %c0_10, %c0_11], %79 {strides = array<i32>} : memref<2x8x384xf32, #tpu.memory_space<vmem>>, vector<1x8x384xf32>,
    %c9 = arith.constant 9 : index
    %80 = memref.load %arg1[%c9] : memref<18xf32, #tpu.memory_space<smem>>
    %81 = vector.broadcast %80 : f32 to vector<8x384xf32>
    %82 = arith.mulf %81, %35 : vector<8x384xf32>
    %c10 = arith.constant 10 : index
    %83 = memref.load %arg1[%c10] : memref<18xf32, #tpu.memory_space<smem>>
    %84 = vector.broadcast %83 : f32 to vector<8x384xf32>
    %85 = arith.mulf %84, %32 : vector<8x384xf32>
    %86 = arith.addf %82, %85 : vector<8x384xf32>
    %c11 = arith.constant 11 : index
    %87 = memref.load %arg1[%c11] : memref<18xf32, #tpu.memory_space<smem>>
    %88 = vector.broadcast %87 : f32 to vector<8x384xf32>
    %89 = arith.addf %86, %88 : vector<8x384xf32>
    %c12 = arith.constant 12 : index
    %90 = memref.load %arg1[%c12] : memref<18xf32, #tpu.memory_space<smem>>
    %91 = vector.broadcast %90 : f32 to vector<8x384xf32>
    %92 = arith.mulf %91, %35 : vector<8x384xf32>
    %c13 = arith.constant 13 : index
    %93 = memref.load %arg1[%c13] : memref<18xf32, #tpu.memory_space<smem>>
    %94 = vector.broadcast %93 : f32 to vector<8x384xf32>
    %95 = arith.mulf %94, %32 : vector<8x384xf32>
    %96 = arith.addf %92, %95 : vector<8x384xf32>
    %c14 = arith.constant 14 : index
    %97 = memref.load %arg1[%c14] : memref<18xf32, #tpu.memory_space<smem>>
    %98 = vector.broadcast %97 : f32 to vector<8x384xf32>
    %99 = arith.addf %96, %98 : vector<8x384xf32>
    %c15 = arith.constant 15 : index
    %100 = memref.load %arg1[%c15] : memref<18xf32, #tpu.memory_space<smem>>
    %101 = vector.broadcast %100 : f32 to vector<8x384xf32>
    %102 = arith.mulf %101, %35 : vector<8x384xf32>
    %c16 = arith.constant 16 : index
    %103 = memref.load %arg1[%c16] : memref<18xf32, #tpu.memory_space<smem>>
    %104 = vector.broadcast %103 : f32 to vector<8x384xf32>
    %105 = arith.mulf %104, %32 : vector<8x384xf32>
    %106 = arith.addf %102, %105 : vector<8x384xf32>
    %c17 = arith.constant 17 : index
    %107 = memref.load %arg1[%c17] : memref<18xf32, #tpu.memory_space<smem>>
    %108 = vector.broadcast %107 : f32 to vector<8x384xf32>
    %109 = arith.addf %106, %108 : vector<8x384xf32>
    %110 = arith.mulf %89, %89 : vector<8x384xf32>
    %111 = arith.mulf %99, %99 : vector<8x384xf32>
    %112 = arith.addf %110, %111 : vector<8x384xf32>
    %113 = arith.mulf %109, %109 : vector<8x384xf32>
    %114 = arith.addf %112, %113 : vector<8x384xf32>
    %cst_12 = arith.constant 1.000000e-24 : f32
    %115 = vector.broadcast %cst_12 : f32 to vector<8x384xf32>
    %116 = arith.maximumf %114, %115 : vector<8x384xf32>
    %117 = math.rsqrt %116 : vector<8x384xf32>
    %118 = arith.select %17, %99, %109 : vector<8x384xi1>, vector<8x384xf32>
    %119 = arith.select %13, %89, %118 : vector<8x384xi1>, vector<8x384xf32>
    %120 = arith.mulf %119, %117 : vector<8x384xf32>
    %c1_13 = arith.constant 1 : index
    %c0_14 = arith.constant 0 : index
    %c0_15 = arith.constant 0 : index
    %121 = vector.load %arg2[%c1_13, %c0_14, %c0_15] : memref<2x8x384xf32, #tpu.memory_space<vmem>>, vector<1x8x384xf32>
    %122 = vector.shape_cast %121 : vector<1x8x384xf32> to vector<8x384xf32>
    %123 = vector.shape_cast %120 : vector<8x384xf32> to vector<1x8x384xf32>
    tpu.vector_store %arg2[%c1_13, %c0_14, %c0_15], %123 {strides = array<i32>} : memref<2x8x384xf32, #tpu.memory_space<vmem>>, vector<1x8x384xf32>,
    return
  }
  func.func @transform_0(%arg0: i32) -> i32 {
    %c0_i32 = arith.constant 0 : i32
    %c0_i32_0 = arith.constant 0 : i32
    return %c0_i32 : i32
  }
  func.func @transform_1(%arg0: i32) -> (i32, i32, i32) {
    %c0_i32 = arith.constant 0 : i32
    %c0_i32_0 = arith.constant 0 : i32
    %c0_i32_1 = arith.constant 0 : i32
    return %c0_i32, %arg0, %c0_i32_0 : i32, i32, i32
  }
}

</mosaic_0001>

<bundles_post_ra>
// kernel: ray_sampler.1
= control target key start
LH: loop header
LB: loop body
LE: loop exit
PB: predicated region body
PF: predicated region fallthrough
CT: control target
= control target key end

     0   :  { %6 = vsyncpa [#allocation3], 0  ;;  %s588_s0 = inlined_call_operand.vmem [shape: f32[18], index: 0, kind: input, shape index: {}]   ;;  %s589_s1 = inlined_call_operand.vmem [shape: f32[2,8,384], index: 1, kind: output, shape index: {}]  }
   0x1   :  { %s13_s8 = sshll.u32 %s588_s0, 4  ;;  %s14_s8 = int_to_ptr.vmem [resolvable:$true] %s13_s8 }
   0x2   :  { %s300_s9 = scalar_lea.vmem %s14_s8, 16  ;;  %p305_p1 = scmp.lt.s32.totalorder %s14_s8, %s14_s8 }
   0x3   :  { %p301_p0 = scmp.ne.s32.totalorder %s14_s8, %s300_s9  ;;  %p306_p2 = scmp.lt.s32.totalorder %s300_s9, %s300_s9 }
   0x5   :  { %p307_p3 = por %p306_p2, %p305_p1 }
   0x7   :  { %p308_p4 = pnand %p307_p3, %p301_p0 }
   0x9   :  { %311 = shalt.err (!%p308_p4)
}
   0xa   :  { %s314_s10 = smov [#allocation2]  }
   0xb   :  { %16 = dma.vmem_to_smem %s14_s8, 16, %s314_s10, [#allocation3]  }
   0xc   :  { %312 = dma.done.wait [#allocation3], 16  }
   0xd   :  { %313 = vsyncadd [#allocation3], 4294967280 }
   0xe   :  { %20 = sfence }
   0xf   :  { %v21_v0 = vlaneseq  ;;  %s328_s11 = sld [smem:[#allocation2]] }
  0x10   :  { %s330_s12 = sld [smem:[#allocation2 + $0x1]] }
  0x11   :  { %v22_v1 = vand.u32 127, %v21_v0  ;;  %v62_v2 = vshrl.u32 %v21_v0, 7  ;;  %s332_s0 = sld [smem:[#allocation2 + $0x2]] }
  0x12   :  { %s336_s13 = sld [smem:[#allocation2 + $0x3]] }
  0x13   :  { %v25_v3 = vcvt.s32.f32 %v22_v1  ;;  %v63_v4 = vcvt.s32.f32 %v62_v2  ;;  %v23_v5 = vadd.s32 128, %v22_v1  ;;  %v334_v6 = vadd.s32 256, %v22_v1  ;;  %s338_s14 = sld [smem:[#allocation2 + $0x4]] }
  0x14   :  { %s340_s15 = sld [smem:[#allocation2 + $0x5]] }
  0x15   :  { %v28_v7 = vadd.f32 0.5, %v25_v3  ;;  %v26_v8 = vcvt.s32.f32 %v23_v5  ;;  %v27_v9 = vcvt.s32.f32 %v334_v6  ;;  %v66_v11 = vmul.f32 128.0, %v63_v4  ;;  %s343_s16 = sld [smem:[#allocation2 + $0x6]] }
  0x16   :  { %s345_s17 = sld [smem:[#allocation2 + $0x7]]  ;;  %v88_v22 = vstv %s328_s11  ;;  %v93_v23 = vstv %s330_s12 }
  0x17   :  { %v31_v10 = vmul.f32 0.33333334, %v28_v7  ;;  %v29_v12 = vadd.f32 0.5, %v26_v8  ;;  %v30_v13 = vadd.f32 0.5, %v27_v9  ;;  %s274_s18 = sld [smem:[#allocation2 + $0x8]]  ;;  %v358_v27 = vstv %s332_s0 }
  0x18   :  { %s276_s19 = sld [smem:[#allocation2 + $0xa]]  ;;  %v106_v28 = vstv %s336_s13 }
  0x19   :  { %v34_v14 = vfloor.f32 %v31_v10  ;;  %v32_v15 = vmul.f32 0.33333334, %v29_v12  ;;  %v33_v16 = vmul.f32 0.33333334, %v30_v13  ;;  %s275_s20 = sld [smem:[#allocation2 + $0x9]]  ;;  %v111_v30 = vstv %s338_s14 }
  0x1a   :  { %s349_s21 = sld [smem:[#allocation2 + $0xb]]  ;;  %v363_v31 = vstv %s340_s15 }
  0x1b   :  { %v69_v17 = vadd.f32 %v66_v11, %v34_v14  ;;  %v35_v18 = vfloor.f32 %v32_v15  ;;  %v36_v19 = vfloor.f32 %v33_v16  ;;  %v37_v20 = vmul.f32 3.0, %v34_v14  ;;  %s351_s22 = sld [smem:[#allocation2 + $0xc]] }
  0x1c   :  { %s355_s23 = sld [smem:[#allocation2 + $0xd]]  ;;  %v124_v36 = vstv %s343_s16  ;;  %v129_v37 = vstv %s345_s17 }
  0x1d   :  { %v72_v21 = vadd.f32 0.5, %v69_v17  ;;  %v70_v24 = vadd.f32 %v66_v11, %v35_v18  ;;  %v71_v25 = vadd.f32 %v66_v11, %v36_v19  ;;  %v38_v29 = vmul.f32 3.0, %v35_v18  ;;  %s413_s24 = sld [smem:[#allocation2 + $0xe]] }
  0x1e   :  { %v365_v34 = vsub.f32 %v25_v3, %v37_v20  ;;  %v371_v38 = vstv %s274_s18  ;;  %v373_v41 = vstv %s276_s19  ;;  %v378_v44 = vmul.f32 3.0, %v36_v19  ;;  %s417_s25 = sld [smem:[#allocation2 + $0xf]] }
  0x1f   :  { %v75_v26 = vmul.f32 0.0625, %v72_v21  ;;  %v73_v32 = vadd.f32 0.5, %v70_v24  ;;  %v74_v33 = vadd.f32 0.5, %v71_v25  ;;  %v376_v43 = vsub.f32 %v26_v8, %v38_v29  ;;  %s441_s26 = sld [smem:[#allocation2 + $0x10]] }
  0x20   :  { %v380_v45 = vstv %s275_s20  ;;  %v388_v49 = vstv %s349_s21  ;;  %s455_s27 = sld [smem:[#allocation2 + $0x11]]  ;;  %vm52_vm0 = vcmp.lt.f32.partialorder %v365_v34, 1.5  ;;  %vm43_vm1 = vcmp.lt.f32.partialorder %v365_v34, 0.5 }
  0x21   :  { %v367_v35 = vfloor.f32 %v75_v26  ;;  %v76_v39 = vmul.f32 0.0625, %v73_v32  ;;  %v77_v40 = vmul.f32 0.0625, %v74_v33  ;;  %v399_v56 = vstv %s351_s22 }
  0x22   :  { %v402_v57 = vstv %s355_s23  ;;  %vm44_vm2 = vcmp.lt.f32.partialorder %v376_v43, 0.5  ;;  %vm53_vm3 = vcmp.lt.f32.partialorder %v376_v43, 1.5 }
  0x23   :  { %v81_v42 = vmul.f32 16.0, %v367_v35  ;;  %v94_v46 = vmul.f32 %v93_v23, %v367_v35  ;;  %v383_v47 = vfloor.f32 %v76_v39  ;;  %v385_v48 = vfloor.f32 %v77_v40 }
  0x24   :  { %v112_v51 = vmul.f32 %v111_v30, %v367_v35  ;;  %v130_v52 = vmul.f32 %v129_v37, %v367_v35  ;;  %v181_v53 = vmul.f32 %v373_v41, %v367_v35 }
  0x25   :  { %v390_v50 = vsub.f32 %v69_v17, %v81_v42  ;;  %v82_v54 = vmul.f32 16.0, %v383_v47  ;;  %v95_v55 = vmul.f32 %v93_v23, %v383_v47  ;;  %v83_v61 = vmul.f32 16.0, %v385_v48 }
  0x26   :  { %v113_v63 = vmul.f32 %v111_v30, %v383_v47  ;;  %v131_v0 = vmul.f32 %v129_v37, %v383_v47  ;;  %v96_v1 = vmul.f32 %v93_v23, %v385_v48  ;;  %v114_v11 = vmul.f32 %v111_v30, %v385_v48 }
  0x27   :  { %v89_v58 = vmul.f32 %v88_v22, %v390_v50  ;;  %v107_v59 = vmul.f32 %v106_v28, %v390_v50  ;;  %v125_v60 = vmul.f32 %v124_v36, %v390_v50  ;;  %v408_v62 = vsub.f32 %v70_v24, %v82_v54 }
  0x28   :  { %v415_v5 = vsub.f32 %v71_v25, %v83_v61  ;;  %v132_v24 = vmul.f32 %v129_v37, %v385_v48  ;;  %v464_v42 = vstv %s413_s24 }
  0x29   :  { %v97_v2 = vadd.f32 %v94_v46, %v89_v58  ;;  %v115_v3 = vadd.f32 %v112_v51, %v107_v59  ;;  %v133_v4 = vadd.f32 %v130_v52, %v125_v60  ;;  %v90_v7 = vmul.f32 %v88_v22, %v408_v62 }
  0x2a   :  { %v108_v8 = vmul.f32 %v106_v28, %v408_v62  ;;  %v126_v10 = vmul.f32 %v124_v36, %v408_v62  ;;  %v91_v15 = vmul.f32 %v88_v22, %v415_v5  ;;  %v109_v19 = vmul.f32 %v106_v28, %v415_v5 }
  0x2b   :  { %v424_v12 = vadd.f32 %v358_v27, %v97_v2  ;;  %v427_v13 = vadd.f32 %v363_v31, %v115_v3  ;;  %v430_v14 = vadd.f32 %v371_v38, %v133_v4  ;;  %v98_v16 = vadd.f32 %v95_v55, %v90_v7 }
  0x2c   :  { %v116_v17 = vadd.f32 %v113_v63, %v108_v8  ;;  %v134_v18 = vadd.f32 %v131_v0, %v126_v10  ;;  %v176_v28 = vmul.f32 %v380_v45, %v390_v50  ;;  %v99_v30 = vadd.f32 %v96_v1, %v91_v15 }
  0x2d   :  { %v141_v20 = vmul.f32 %v424_v12, %v424_v12  ;;  %v144_v21 = vmul.f32 %v427_v13, %v427_v13  ;;  %v150_v23 = vmul.f32 %v430_v14, %v430_v14  ;;  %v444_v22 = vadd.f32 %v358_v27, %v98_v16 }
  0x2e   :  { %v447_v25 = vadd.f32 %v363_v31, %v116_v17  ;;  %v450_v26 = vadd.f32 %v371_v38, %v134_v18  ;;  %v117_v32 = vadd.f32 %v114_v11, %v109_v19  ;;  %v127_v33 = vmul.f32 %v124_v36, %v415_v5 }
  0x2f   :  { %v147_v29 = vadd.f32 %v144_v21, %v141_v20  ;;  %v142_v37 = vmul.f32 %v444_v22, %v444_v22  ;;  %v468_v51 = vadd.f32 %v358_v27, %v99_v30  ;;  %v211_v52 = vstv %s417_s25 }
  0x30   :  { %v145_v39 = vmul.f32 %v447_v25, %v447_v25  ;;  %v151_v40 = vmul.f32 %v450_v26, %v450_v26  ;;  %v471_v36 = vadd.f32 %v363_v31, %v117_v32  ;;  %v135_v55 = vadd.f32 %v132_v24, %v127_v33 }
  0x31   :  { %v153_v46 = vadd.f32 %v150_v23, %v147_v29  ;;  %v184_v58 = vadd.f32 %v181_v53, %v176_v28  ;;  %v194_v59 = vmul.f32 %v399_v56, %v390_v50  ;;  %v143_v61 = vmul.f32 %v468_v51, %v468_v51 }
  0x32   :  { %v148_v54 = vadd.f32 %v145_v39, %v142_v37  ;;  %v146_v63 = vmul.f32 %v471_v36, %v471_v36  ;;  %v199_v27 = vmul.f32 %v402_v57, %v367_v35  ;;  %v483_v0 = vadd.f32 %v371_v38, %v135_v55 }
  0x33   :  { %v156_v60 = vmax.f32 %v153_v46, 1e-24  ;;  %v486_v53 = vadd.f32 %v388_v49, %v184_v58  ;;  %v212_v1 = vmul.f32 %v211_v52, %v390_v50  ;;  %v216_v4 = vstv %s441_s26 }
  0x34   :  { %v154_v31 = vadd.f32 %v151_v40, %v148_v54  ;;  %v149_v2 = vadd.f32 %v146_v63, %v143_v61  ;;  %v202_v3 = vadd.f32 %v199_v27, %v194_v59  ;;  %v494_v8 = vsub.f32 %v27_v9, %v378_v44 }
  0x35   :  { %288 = vrsqrt.f32 %v156_v60  ;;  %v152_v38 = vmul.f32 %v483_v0, %v483_v0  ;;  %v217_v10 = vmul.f32 %v216_v4, %v367_v35  ;;  %v224_v11 = vstv %s455_s27 }
  0x36   :  { %v157_v7 = vmax.f32 %v154_v31, 1e-24  ;;  %v502_v50 = vadd.f32 %v464_v42, %v202_v3  ;;  %v228_v15 = vmul.f32 %v486_v53, %v486_v53  ;;  %v177_v44 = vmul.f32 %v380_v45, %v408_v62 }
  0x37   :  { %v155_v6 = vadd.f32 %v152_v38, %v149_v2  ;;  %v220_v9 = vadd.f32 %v217_v10, %v212_v1  ;;  %v182_v16 = vmul.f32 %v373_v41, %v383_v47  ;;  %v195_v17 = vmul.f32 %v399_v56, %v408_v62 }
  0x38   :  { %290 = vrsqrt.f32 %v157_v7  ;;  %v231_v35 = vmul.f32 %v502_v50, %v502_v50  ;;  %v200_v18 = vmul.f32 %v402_v57, %v383_v47  ;;  %v213_v21 = vmul.f32 %v211_v52, %v408_v62 }
  0x39   :  { %v158_v19 = vmax.f32 %v155_v6, 1e-24  ;;  %v225_v20 = vadd.f32 %v224_v11, %v220_v9  ;;  %v218_v23 = vmul.f32 %v216_v4, %v383_v47  ;;  %v185_v28 = vadd.f32 %v182_v16, %v177_v44 }
  0x3a   :  { %v234_v24 = vadd.f32 %v231_v35, %v228_v15  ;;  %v203_v29 = vadd.f32 %v200_v18, %v195_v17  ;;  %v178_v30 = vmul.f32 %v380_v45, %v415_v5  ;;  %v162_v32 = vsel %vm52_vm0, %v427_v13, %v430_v14 }
  0x3b   :  { %292 = vrsqrt.f32 %v158_v19  ;;  %v237_v33 = vmul.f32 %v225_v20, %v225_v20  ;;  %v221_v37 = vadd.f32 %v218_v23, %v213_v21  ;;  %v163_v62 = vsel %vm53_vm3, %v447_v25, %v450_v26 }
  0x3c   :  { %v190_v47 = vadd.f32 %v388_v49, %v185_v28  ;;  %v208_v39 = vadd.f32 %v464_v42, %v203_v29  ;;  %v183_v45 = vmul.f32 %v373_v41, %v385_v48  ;;  %v196_v13 = vmul.f32 %v399_v56, %v415_v5 }
  0x3d   :  { %v240_v40 = vadd.f32 %v237_v33, %v234_v24  ;;  %v226_v46 = vadd.f32 %v224_v11, %v221_v37  ;;  %v201_v14 = vmul.f32 %v402_v57, %v385_v48  ;;  %v214_v25 = vmul.f32 %v211_v52, %v415_v5 }
  0x3e   :  { %v229_v54 = vmul.f32 %v190_v47, %v190_v47  ;;  %v232_v55 = vmul.f32 %v208_v39, %v208_v39  ;;  %v186_v58 = vadd.f32 %v183_v45, %v178_v30  ;;  %v165_v26 = vsel %vm43_vm1, %v424_v12, %v162_v32 }
  0x3f   :  { %v243_v59 = vmax.f32 %v240_v40, 1e-24  ;;  %v238_v60 = vmul.f32 %v226_v46, %v226_v46  ;;  %v204_v41 = vadd.f32 %v201_v14, %v196_v13  ;;  %vm54_vm4 = vcmp.lt.f32.partialorder %v494_v8, 1.5 }
  0x40   :  { %v235_v61 = vadd.f32 %v232_v55, %v229_v54  ;;  %v191_v56 = vadd.f32 %v388_v49, %v186_v58  ;;  %v219_v63 = vmul.f32 %v216_v4, %v385_v48  ;;  %v166_v27 = vsel %vm44_vm2, %v444_v22, %v163_v62 }
  0x41   :  { %294 = vrsqrt.f32 %v243_v59  ;;  %v209_v5 = vadd.f32 %v464_v42, %v204_v41  ;;  %vm45_vm5 = vcmp.lt.f32.partialorder %v494_v8, 0.5  ;;  %v164_v49 = vsel %vm54_vm4, %v471_v36, %v483_v0 }
  0x42   :  { %v289_v57 = vpop.eup %288  ;;  %v241_v12 = vadd.f32 %v238_v60, %v235_v61  ;;  %v222_v31 = vadd.f32 %v219_v63, %v214_v25  ;;  %v230_v1 = vmul.f32 %v191_v56, %v191_v56  ;;  %v167_v7 = vsel %vm45_vm5, %v468_v51, %v164_v49 }
  0x43   :  { %v168_v52 = vmul.f32 %v289_v57, %v165_v26  ;;  %v233_v48 = vmul.f32 %v209_v5, %v209_v5  ;;  %v249_v15 = vsel %vm52_vm0, %v502_v50, %v225_v20  ;;  %v250_v9 = vsel %vm53_vm3, %v208_v39, %v226_v46 }
  0x44   :  { %v244_v22 = vmax.f32 %v241_v12, 1e-24  ;;  %v227_v3 = vadd.f32 %v224_v11, %v222_v31  ;;  %v252_v51 = vsel %vm43_vm1, %v486_v53, %v249_v15  ;;  %v253_v50 = vsel %vm44_vm2, %v190_v47, %v250_v9 }
  0x45   :  { %v291_v2 = vpop.eup %290  ;;  %171 = vst [vmem:[%s589_s1] sm:$0xff] %v168_v52  ;;  %v236_v4 = vadd.f32 %v233_v48, %v230_v1 }
  0x46   :  { %v169_v42 = vmul.f32 %v291_v2, %v166_v27  ;;  %296 = vrsqrt.f32 %v244_v22  ;;  %v239_v38 = vmul.f32 %v227_v3, %v227_v3  ;;  %v251_v17 = vsel %vm54_vm4, %v209_v5, %v227_v3 }
  0x47   :  { %v254_v34 = vsel %vm45_vm5, %v191_v56, %v251_v17 }
  0x48   :  { %172 = vst [vmem:[%s589_s1 + $0x8] sm:$0xff] %v169_v42  ;;  %v293_v36 = vpop.eup %292  ;;  %v242_v0 = vadd.f32 %v239_v38, %v236_v4 }
  0x49   :  { %v170_v10 = vmul.f32 %v293_v36, %v167_v7 }
  0x4a   :  { %v245_v11 = vmax.f32 %v242_v0, 1e-24 }
  0x4b   :  { %173 = vst [vmem:[%s589_s1 + $0x10] sm:$0xff] %v170_v10 }
  0x4c   :  { %298 = vrsqrt.f32 %v245_v11 }
  0x4e   :  { %v295_v6 = vpop.eup %294 }
  0x4f   :  { %v255_v44 = vmul.f32 %v295_v6, %v252_v51 }
  0x51   :  { %284 = vst [vmem:[%s589_s1 + $0x18] sm:$0xff] %v255_v44 }
  0x53   :  { %v297_v35 = vpop.eup %296 }
  0x54   :  { %v256_v16 = vmul.f32 %v297_v35, %v253_v50 }
  0x56   :  { %285 = vst [vmem:[%s589_s1 + $0x20] sm:$0xff] %v256_v16 }
  0x59   :  { %v299_v53 = vpop.eup %298 }
  0x5a   :  { %v257_v18 = vmul.f32 %v299_v53, %v254_v34 }
  0x5c   :  { %286 = vst [vmem:[%s589_s1 + $0x28] sm:$0xff] %v257_v18 }
  0x5d   :  { %266 = vsyncpa [#allocation3], 1 }

</bundles_post_ra>
